<compile_context>
chip_gen: v6e
topology: v6e:2x2x1
jax: 0.10.0
libtpu: 0.0.40
codegen_flags: <defaults>
</compile_context>

<pallas_src>
import functools
from typing import NamedTuple, Optional

import jax
import jax.numpy as jnp
from jax.experimental import pallas as pl
from jax.experimental.pallas import tpu as pltpu


def _round_up(x: int, m: int) -> int:
    return ((x + m - 1) // m) * m


class LinearPlan(NamedTuple):
    n_input: int
    n_output: int
    m_pad: int
    k_pad: int
    n_pad: int
    tm: int
    tn: int
    tk: int
    single_k: bool
    compute_dtype: str
    out_dtype: str
    vmem_limit: int


def _vmem_budget_bytes() -> int:
    """Generation-aware scoped-VMEM budget (~75% of physical per-core VMEM)."""
    try:
        cap = int(pltpu.get_tpu_info().vmem_capacity_bytes)
    except Exception:
        cap = 64 * 1024 * 1024  # conservative fallback (v7x per-TC size)
    return min(int(cap * 3 // 4), 100 * 1024 * 1024)


def plan_linear(batch: int, n_input: int, n_output: int, *,
                x_dtype=jnp.float32, compute_dtype=None) -> LinearPlan:
    """Pick padded dims / tiles for y = x @ W^T given shapes and VMEM budget."""
    out_dtype = jnp.dtype(x_dtype)
    cdt = jnp.dtype(compute_dtype) if compute_dtype is not None else out_dtype
    bpe = cdt.itemsize
    obpe = out_dtype.itemsize
    sub = 8 if bpe >= 4 else (16 if bpe == 2 else 32)   # sublane multiple per dtype

    m_pad = _round_up(batch, sub)
    k_pad = _round_up(n_input, 128)
    n_pad = _round_up(n_output, 128)

    budget = _vmem_budget_bytes()
    headroom = 2 * 1024 * 1024

    def fits(tm, tn, tk, with_acc):
        b = 2 * (tm * tk + tk * tn) * bpe + 2 * tm * tn * obpe
        if with_acc:
            b += tm * tn * 4
        return b + headroom <= budget

    tm_cands = [c for c in (512, 256, 128, 64, 32, 16, 8) if c % sub == 0]
    tn_cands = (1024, 512, 256, 128)

    # Path A: whole K in one tile (no reduction axis, no accumulator scratch).
    for tn_c in tn_cands:
        tn = min(tn_c, n_pad)
        for tm_c in tm_cands:
            tm = min(tm_c, m_pad)
            if fits(tm, tn, k_pad, with_acc=False):
                return LinearPlan(
                    n_input, n_output,
                    _round_up(m_pad, tm), k_pad, _round_up(n_pad, tn),
                    tm, tn, k_pad, True, cdt.name, out_dtype.name, budget)

    # Path B: K too large for VMEM -> tiled reduction with f32 accumulator.
    tm = min(512, m_pad)
    tn = min(512, n_pad)
    tk = 128
    for tk_c in (2048, 1024, 512, 256, 128):
        if fits(tm, tn, tk_c, with_acc=True):
            tk = tk_c
            break
    return LinearPlan(
        n_input, n_output,
        _round_up(m_pad, tm), _round_up(k_pad, tk), _round_up(n_pad, tn),
        tm, tn, tk, False, cdt.name, out_dtype.name, budget)


def prepare_weight(weight, plan: LinearPlan):
    """One-time weight prep: (n_output, n_input) -> padded W^T of shape (k_pad, n_pad).

    Done once at init (outside the per-call forward) so neither the transpose nor
    the full-weight pad is re-materialized on every call.
    """
    n_output, n_input = weight.shape
    assert (n_input, n_output) == (plan.n_input, plan.n_output), "weight shape mismatch"
    wT = jnp.asarray(weight).T.astype(jnp.dtype(plan.compute_dtype))
    return jnp.pad(wT, ((0, plan.k_pad - n_input), (0, plan.n_pad - n_output)))


def _linear_kernel_fullk(x_ref, w_ref, o_ref):
    # x_ref: (tm, K), w_ref: (K, tn) already MXU-native -> one matmul, direct store.
    o_ref[...] = jnp.dot(
        x_ref[...], w_ref[...], preferred_element_type=jnp.float32
    ).astype(o_ref.dtype)


def _linear_kernel_tiledk(x_ref, w_ref, o_ref, acc_ref):
    # Grid = (N-blocks, M-blocks, K-blocks); K is axis 2 (innermost, "arbitrary").
    k = pl.program_id(2)

    @pl.when(k == 0)
    def _():
        acc_ref[...] = jnp.zeros_like(acc_ref)

    acc_ref[...] += jnp.dot(
        x_ref[...], w_ref[...], preferred_element_type=jnp.float32
    )

    @pl.when(k == pl.num_programs(2) - 1)
    def _():
        o_ref[...] = acc_ref[...].astype(o_ref.dtype)


@functools.partial(jax.jit, static_argnames=("plan",))
def nn_classifier_forward(x, wT_padded, *, plan: LinearPlan):
    """Forward of NN_classifier: y = x @ W^T (no bias).

    x:         (B, n_input)
    wT_padded: (k_pad, n_pad) prepared by prepare_weight()
    returns    (B, n_output) in the original x dtype
    """
    B, n_input = x.shape
    assert n_input == plan.n_input, "in_features mismatch"
    assert wT_padded.shape == (plan.k_pad, plan.n_pad), "weight not prepared for this plan"

    cdt = jnp.dtype(plan.compute_dtype)
    odt = jnp.dtype(plan.out_dtype)

    xp = x.astype(cdt)
    if (plan.m_pad, plan.k_pad) != (B, n_input):
        xp = jnp.pad(xp, ((0, plan.m_pad - B), (0, plan.k_pad - n_input)))

    tm, tn, tk = plan.tm, plan.tn, plan.tk
    m_blocks = plan.m_pad // tm
    n_blocks = plan.n_pad // tn
    k_blocks = plan.k_pad // tk

    bpe = cdt.itemsize
    obpe = odt.itemsize
    cost = pl.CostEstimate(
        flops=2 * plan.m_pad * plan.k_pad * plan.n_pad,
        transcendentals=0,
        bytes_accessed=int(
            plan.m_pad * plan.k_pad * bpe * n_blocks                       # x re-read per N block
            + plan.k_pad * plan.n_pad * bpe * (1 if plan.single_k else m_blocks)
            + plan.m_pad * plan.n_pad * obpe
        ),
    )

    if plan.single_k:
        # Grid (j, i): j over N (outer, megacore-sharded), i over M (inner).
        # Weight block index (0, j) is constant across the inner axis, so the
        # W^T tile stays resident and is DMA'd from HBM exactly once per j.
        out_padded = pl.pallas_call(
            _linear_kernel_fullk,
            out_shape=jax.ShapeDtypeStruct((plan.m_pad, plan.n_pad), odt),
            grid_spec=pltpu.PrefetchScalarGridSpec(
                num_scalar_prefetch=0,
                grid=(n_blocks, m_blocks),
                in_specs=[
                    pl.BlockSpec((tm, tk), lambda j, i: (i, 0)),   # activations
                    pl.BlockSpec((tk, tn), lambda j, i: (0, j)),   # W^T (resident over i)
                ],
                out_specs=pl.BlockSpec((tm, tn), lambda j, i: (i, j)),
            ),
            compiler_params=pltpu.CompilerParams(
                dimension_semantics=("parallel", "parallel"),
                vmem_limit_bytes=plan.vmem_limit,
            ),
            cost_estimate=cost,
        )(xp, wT_padded)
    else:
        # Grid (j, i, k): K innermost reduction axis, f32 VMEM accumulator.
        out_padded = pl.pallas_call(
            _linear_kernel_tiledk,
            out_shape=jax.ShapeDtypeStruct((plan.m_pad, plan.n_pad), odt),
            grid_spec=pltpu.PrefetchScalarGridSpec(
                num_scalar_prefetch=0,
                grid=(n_blocks, m_blocks, k_blocks),
                in_specs=[
                    pl.BlockSpec((tm, tk), lambda j, i, k: (i, k)),
                    pl.BlockSpec((tk, tn), lambda j, i, k: (k, j)),
                ],
                out_specs=pl.BlockSpec((tm, tn), lambda j, i, k: (i, j)),
                scratch_shapes=[pltpu.VMEM((tm, tn), jnp.float32)],
            ),
            compiler_params=pltpu.CompilerParams(
                dimension_semantics=("parallel", "parallel", "arbitrary"),
                vmem_limit_bytes=plan.vmem_limit,
            ),
            cost_estimate=cost,
        )(xp, wT_padded)

    return out_padded[:B, :plan.n_output]


if __name__ == "__main__":
    # Small shapes consistent with the module: batch=8, n_input=32, n_output=16.
    B, n_input, n_output = 8, 32, 16

    key = jax.random.PRNGKey(0)
    kx, kw = jax.random.split(key)

    x = jax.random.normal(kx, (B, n_input), dtype=jnp.float32)
    # Deterministic init mimicking nn.Linear's uniform(-1/sqrt(fan_in), 1/sqrt(fan_in))
    bound = 1.0 / (n_input ** 0.5)
    weight = jax.random.uniform(
        kw, (n_output, n_input), dtype=jnp.float32, minval=-bound, maxval=bound
    )

    ref = x @ weight.T

    # Default f32 path.
    plan_f32 = plan_linear(B, n_input, n_output, x_dtype=x.dtype)
    wT_f32 = prepare_weight(weight, plan_f32)          # one-time weight prep
    out = jax.block_until_ready(nn_classifier_forward(x, wT_f32, plan=plan_f32))
    assert out.shape == (B, n_output)
    assert jnp.allclose(out, ref, atol=1e-5, rtol=1e-5), "f32 path mismatch vs reference"

    # Optional bf16-operand path (f32 accumulation) — MXU-native on v6e/v7x,
    # halves HBM bytes on bandwidth-starved v5e.
    plan_bf16 = plan_linear(B, n_input, n_output, x_dtype=x.dtype,
                            compute_dtype=jnp.bfloat16)
    wT_bf16 = prepare_weight(weight, plan_bf16)
    out_bf16 = jax.block_until_ready(nn_classifier_forward(x, wT_bf16, plan=plan_bf16))
    assert out_bf16.shape == (B, n_output)
    assert jnp.allclose(out_bf16, ref, atol=3e-2, rtol=3e-2), "bf16 path mismatch vs reference"

    print("KERNEL_OK")
</pallas_src>

<mosaic_0001>
module attributes {stable_mosaic.version = 11 : i64} {
  func.func @_linear_kernel_fullk(%arg0: i32, %arg1: i32, %arg2: memref<8x128xf32, #tpu.memory_space<vmem>>, %arg3: memref<128x128xf32, #tpu.memory_space<vmem>>, %arg4: memref<8x128xf32, #tpu.memory_space<vmem>>) attributes {dimension_semantics = [#tpu.dimension_semantics<parallel>, #tpu.dimension_semantics<parallel>], iteration_bounds = array<i64: 1, 1>, scalar_prefetch = 0 : i64, scratch_operands = 0 : i64, tpu.core_type = #tpu.core_type<tc>, window_params = [{transform_indices = @transform_0, window_bounds = array<i64: 8, 128>}, {transform_indices = @transform_1, window_bounds = array<i64: 128, 128>}, {transform_indices = @transform_2, window_bounds = array<i64: 8, 128>}]} {
    %c0 = arith.constant 0 : index
    %c0_0 = arith.constant 0 : index
    %0 = vector.load %arg2[%c0, %c0_0] : memref<8x128xf32, #tpu.memory_space<vmem>>, vector<8x128xf32>
    %c0_1 = arith.constant 0 : index
    %c0_2 = arith.constant 0 : index
    %1 = vector.load %arg3[%c0_1, %c0_2] : memref<128x128xf32, #tpu.memory_space<vmem>>, vector<128x128xf32>
    %cst = arith.constant dense<0.000000e+00> : vector<8x128xf32>
    %2 = tpu.matmul %0, %1, %cst {dimension_numbers = #tpu.dot_dimension_numbers<[1], [0], [0], [1], [0, 0, 1, 1], [], []>} : vector<8x128xf32>, vector<128x128xf32>, vector<8x128xf32> -> vector<8x128xf32>
    %c0_3 = arith.constant 0 : index
    %c0_4 = arith.constant 0 : index
    %3 = vector.load %arg4[%c0_3, %c0_4] : memref<8x128xf32, #tpu.memory_space<vmem>>, vector<8x128xf32>
    tpu.vector_store %arg4[%c0_3, %c0_4], %2 {strides = array<i32>} : memref<8x128xf32, #tpu.memory_space<vmem>>, vector<8x128xf32>,
    return
  }
  func.func @transform_0(%arg0: i32, %arg1: i32) -> (i32, i32) {
    %c0_i32 = arith.constant 0 : i32
    %c0_i32_0 = arith.constant 0 : i32
    return %arg1, %c0_i32 : i32, i32
  }
  func.func @transform_1(%arg0: i32, %arg1: i32) -> (i32, i32) {
    %c0_i32 = arith.constant 0 : i32
    %c0_i32_0 = arith.constant 0 : i32
    return %c0_i32, %arg0 : i32, i32
  }
  func.func @transform_2(%arg0: i32, %arg1: i32) -> (i32, i32) {
    %c0_i32 = arith.constant 0 : i32
    return %arg1, %arg0 : i32, i32
  }
}

</mosaic_0001>

<bundles_post_ra>
// kernel: nn_classifier_forward.1
= control target key start
LH: loop header
LB: loop body
LE: loop exit
PB: predicated region body
PF: predicated region fallthrough
CT: control target
= control target key end

     0   :  { %7 = vsyncpa [#allocation3], 0  ;;  %s261_s0 = inlined_call_operand.vmem [shape: f32[8,128], index: 0, kind: input, shape index: {}]   ;;  %s262_s1 = inlined_call_operand.hbm [shape: f32[128,128], index: 1, kind: input, shape index: {}]   ;;  %s263_s2 = inlined_call_operand.hbm [shape: f32[8,128], index: 2, kind: output, shape index: {}]  }
   0x1   :  { %8 = vsyncpa [#allocation4], 0  ;;  %s231_s9 = smov [#allocation2]  }
   0x2   :  { %s16_s10 = sshll.u32 %s231_s9, 4  ;;  %s17_s10 = int_to_ptr.vmem [resolvable:$true] %s16_s10 }
   0x3   :  { %s195_s11 = scalar_lea.vmem %s17_s10, 2048  ;;  %p200_p1 = scmp.lt.s32.totalorder %s17_s10, %s17_s10 }
   0x4   :  { %p196_p0 = scmp.ne.s32.totalorder %s17_s10, %s195_s11  ;;  %p201_p2 = scmp.lt.s32.totalorder %s195_s11, %s195_s11 }
   0x6   :  { %p202_p3 = por %p201_p2, %p200_p1 }
   0x8   :  { %p203_p4 = pnand %p202_p3, %p196_p0 }
   0xa   :  { %206 = shalt.err (!%p203_p4)
}
   0xb   :  { %s232_s12 = smov 128   ;;  %s233_s13 = smov 8  }
   0xc   :  { %22 = dma.hbm_to_vmem [thread:$0]  %s262_s1, 2048, %s17_s10, [#allocation3], %s232_s12, %s232_s12, %s233_s13  }
   0xd   :  { %227 = dma.done.wait [#allocation3], 2048  }
   0xe   :  { %228 = vsyncadd [#allocation3], 4294965248  ;;  %v234_v0 = vmov 0.0   ;;  %vm235_vm0 = vmmov 0   ;;  %v42_v1 = vld [vmem:[#allocation2 + $0x78] sm:$0xff]  ;;  %v41_v2 = vld [vmem:[#allocation2 + $0x70] sm:$0xff] }
   0xf   :  { %146 = vmatprep.subr.mxu0 %v234_v0  ;;  %178 = vmatprep.mubr.msk.f32.mxu0 %vm235_vm0, %v234_v0  ;;  %v40_v3 = vld [vmem:[#allocation2 + $0x68] sm:$0xff]  ;;  %v39_v4 = vld [vmem:[#allocation2 + $0x60] sm:$0xff]  ;;  %v38_v5 = vld [vmem:[#allocation2 + $0x58] sm:$0xff]  ;;  %s236_s17 = smov [#allocation5]  }
  0x10   :  { %147 = vmatpush3.msra.mxu0 %v42_v1  ;;  %v37_v6 = vld [vmem:[#allocation2 + $0x50] sm:$0xff]  ;;  %v36_v7 = vld [vmem:[#allocation2 + $0x48] sm:$0xff]  ;;  %v35_v8 = vld [vmem:[#allocation2 + $0x40] sm:$0xff]  ;;  %s120_s18 = sshll.u32 %s236_s17, 4  ;;  %s121_s18 = int_to_ptr.vmem [resolvable:$true] %s120_s18 }
  0x11   :  { %148 = vmatprep.subr.mxu0 %v234_v0  ;;  %v34_v9 = vld [vmem:[#allocation2 + $0x38] sm:$0xff]  ;;  %v33_v10 = vld [vmem:[#allocation2 + $0x30] sm:$0xff]  ;;  %v32_v11 = vld [vmem:[#allocation2 + $0x28] sm:$0xff]  ;;  %s207_s19 = scalar_lea.vmem %s121_s18, 128  ;;  %p212_p6 = scmp.lt.s32.totalorder %s121_s18, %s121_s18 }
  0x12   :  { %149 = vmatpush3.msra.mxu0 %v41_v2  ;;  %v31_v12 = vld [vmem:[#allocation2 + $0x20] sm:$0xff]  ;;  %v30_v13 = vld [vmem:[#allocation2 + $0x18] sm:$0xff]  ;;  %v29_v14 = vld [vmem:[#allocation2 + $0x10] sm:$0xff]  ;;  %p208_p5 = scmp.ne.s32.totalorder %s121_s18, %s207_s19  ;;  %p213_p7 = scmp.lt.s32.totalorder %s207_s19, %s207_s19 }
  0x13   :  { %150 = vmatprep.subr.mxu0 %v234_v0  ;;  %v28_v15 = vld [vmem:[#allocation2 + $0x8] sm:$0xff]  ;;  %v27_v16 = vld [vmem:[#allocation2] sm:$0xff] }
  0x14   :  { %151 = vmatpush3.msra.mxu0 %v40_v3  ;;  %v26_v17 = vld [vmem:[%s261_s0] sm:$0xff]  ;;  %p214_p8 = por %p213_p7, %p212_p6 }
  0x15   :  { %152 = vmatprep.subr.mxu0 %v234_v0 }
  0x16   :  { %153 = vmatpush3.msra.mxu0 %v39_v4  ;;  %p215_p9 = pnand %p214_p8, %p208_p5 }
  0x17   :  { %154 = vmatprep.subr.mxu0 %v234_v0 }
  0x18   :  { %155 = vmatpush3.msra.mxu0 %v38_v5 }
  0x19   :  { %156 = vmatprep.subr.mxu0 %v234_v0 }
  0x1a   :  { %157 = vmatpush3.msra.mxu0 %v37_v6 }
  0x1b   :  { %158 = vmatprep.subr.mxu0 %v234_v0 }
  0x1c   :  { %159 = vmatpush3.msra.mxu0 %v36_v7 }
  0x1d   :  { %160 = vmatprep.subr.mxu0 %v234_v0 }
  0x1e   :  { %161 = vmatpush3.msra.mxu0 %v35_v8 }
  0x1f   :  { %162 = vmatprep.subr.mxu0 %v234_v0 }
  0x20   :  { %163 = vmatpush3.msra.mxu0 %v34_v9 }
  0x21   :  { %164 = vmatprep.subr.mxu0 %v234_v0 }
  0x22   :  { %165 = vmatpush3.msra.mxu0 %v33_v10 }
  0x23   :  { %166 = vmatprep.subr.mxu0 %v234_v0 }
  0x24   :  { %167 = vmatpush3.msra.mxu0 %v32_v11 }
  0x25   :  { %168 = vmatprep.subr.mxu0 %v234_v0 }
  0x26   :  { %169 = vmatpush3.msra.mxu0 %v31_v12 }
  0x27   :  { %170 = vmatprep.subr.mxu0 %v234_v0 }
  0x28   :  { %171 = vmatpush3.msra.mxu0 %v30_v13 }
  0x29   :  { %172 = vmatprep.subr.mxu0 %v234_v0 }
  0x2a   :  { %173 = vmatpush3.msra.mxu0 %v29_v14 }
  0x2b   :  { %174 = vmatprep.subr.mxu0 %v234_v0 }
  0x2c   :  { %175 = vmatpush3.msra.mxu0 %v28_v15 }
  0x2d   :  { %176 = vmatprep.subr.mxu0 %v234_v0 }
  0x2e   :  { %177 = vmatpush3.msra.mxu0 %v27_v16 }
  0x2f   :  { %179 = vmatmul.mubr.f32.vlgmr.msra.gmra.mxu0 %v26_v17 }
  0xef   :  { %v109_v18 = vpop.f32.mrf.mxu0 }
  0xf0   :  { %113 = vst [vmem:[#allocation5] sm:$0xff] %v109_v18 }
  0xf1   :  { %v180_v19 = vpop.f32.mrf.mxu0 }
  0xf2   :  { %218 = shalt.err (!%p215_p9)
}
  0xf3   :  { %123 = dma.vmem_to_hbm [thread:$0]  %s121_s18, 128, %s263_s2, [#allocation4]  }
  0xf4   :  { %229 = dma.done.wait [#allocation4], 128  }
  0xf5   :  { %230 = vsyncadd [#allocation4], 4294967168 }
  0xf6   :  { %127 = vsyncpa [#allocation3], 1 }
  0xf7   :  { %128 = vsyncpa [#allocation4], 1 }

</bundles_post_ra>
